<compile_context>
chip_gen: v7x
topology: tpu7x:2x2x1
jax: 0.10.0
libtpu: 0.0.40
codegen_flags: <defaults>
</compile_context>

<pallas_src>
from functools import partial

import jax
import jax.numpy as jnp
from jax.experimental import pallas as pl
from jax.experimental.pallas import tpu as pltpu

EPS = 1e-6


def _round_up(x, m):
    return ((x + m - 1) // m) * m


def _vmem_config():
    """Returns (vmem_limit_bytes, per-block byte budget for pass 2)."""
    mib = 1024 * 1024
    try:
        cap = int(pltpu.get_tpu_info().vmem_capacity_bytes)
    except Exception:  # unknown backend / API drift: stay conservative
        cap = 0
    if cap and cap <= 64 * mib:          # v7x: 64 MiB VMEM per TensorCore
        return 48 * mib, 8 * mib
    if cap >= 100 * mib:                 # v5e / v6e: 128 MiB physical VMEM
        return 64 * mib, 12 * mib
    return 48 * mib, 8 * mib             # unknown: safe everywhere


def _choose_rows(n_rows, row_bytes, sub, budget_bytes, split_for_cores=True):
    """Largest row block (multiple of `sub`, or the whole array) whose single
    buffer fits `budget_bytes`.  If everything fits one block, optionally split
    in two so the "parallel" grid axis feeds both TensorCores on v7x."""
    fit = max(sub, (budget_bytes // max(row_bytes, 1)) // sub * sub)
    if fit >= n_rows:
        if split_for_cores and n_rows > sub:
            half = _round_up((n_rows + 1) // 2, sub)
            if half < n_rows:
                return half
        return n_rows                    # block == full dim is always legal
    return fit


def stats_kernel(x_ref, stats_ref, *, hw):
    """One grid step = one block of flat (b*c) rows.

    x_ref     : VMEM (rows, HW)  activations (HW on lanes, unpadded)
    stats_ref : VMEM (rows, 2)   f32 [mu, sig] per row
    """
    x = x_ref[...].astype(jnp.float32)
    mask = None
    if hw % 128 != 0:
        # Belt-and-braces: keep any physical lane padding out of the sums.
        lane = jax.lax.broadcasted_iota(jnp.int32, x.shape, x.ndim - 1)
        mask = lane < hw
        x = jnp.where(mask, x, 0.0)
    mu = jnp.sum(x, axis=-1, keepdims=True) * (1.0 / hw)
    d = x - mu
    if mask is not None:
        d = jnp.where(mask, d, 0.0)
    # Two-pass variance (numerically safer than E[x^2]-E[x]^2); torch .var()
    # is unbiased -> divide by (hw - 1).
    var = jnp.sum(d * d, axis=-1, keepdims=True) * (1.0 / (hw - 1))
    stats_ref[:, 0:1] = mu
    stats_ref[:, 1:2] = jnp.sqrt(var + EPS)


def apply_kernel(x_ref, ss_ref, o_ref):
    """o = x * scale + shift with per-(b, c)-row scale/shift.

    x_ref  : VMEM (rows, HW)
    ss_ref : VMEM (rows, 2) f32  [scale, shift]
    o_ref  : VMEM (rows, HW)
    """
    ss = ss_ref[...]
    scale = ss[:, 0:1]
    shift = ss[:, 1:2]
    # TODO(synk): for bf16 inputs on v6e/v7x this FMA could stay in bf16 to
    # halve vreg pressure; kept in f32 for accuracy/portability (v5e has no
    # bf16 VALU) since the kernel is HBM-bound anyway.
    x = x_ref[...].astype(jnp.float32)
    o_ref[...] = (x * scale + shift).astype(o_ref.dtype)


def mixstyle_pallas(x, lmda, perm):
    """x: (B, C, H, W) NCHW.  lmda: (B,) f32 folded Beta(0.1, 0.1) samples
    (already reflected so lmda >= 0.5).  perm: (B,) int32 batch permutation."""
    B, C, H, W = x.shape
    HW = H * W
    assert HW > 1, "MixStyle needs >1 spatial element (unbiased variance)"
    N = B * C

    lmda = lmda.astype(jnp.float32)
    perm = perm.astype(jnp.int32)

    xr = x.reshape(N, HW)                      # HW on lanes; no pad round trip
    itemsize = jnp.dtype(x.dtype).itemsize
    sub = max(8, 32 // itemsize)               # sublanes: 8 f32 / 16 bf16 / 32 i8

    vmem_limit, budget2 = _vmem_config()
    budget1 = 2 * budget2                      # pass 1 only double-buffers input
    # TODO(synk): rows so large that a single sublane-tile of them exceeds the
    # block budget (enormous H*W) would need an HW-axis reduction grid; not
    # implemented here.

    r1 = _choose_rows(N, HW * itemsize, sub, budget1)
    r2 = _choose_rows(N, HW * itemsize, sub, budget2)

    cparams = pltpu.CompilerParams(
        dimension_semantics=("parallel",),
        vmem_limit_bytes=vmem_limit,
    )

    # ---- pass 1: per-(b, c) spatial statistics (one streaming read of x) ----
    stats = pl.pallas_call(
        partial(stats_kernel, hw=HW),
        out_shape=jax.ShapeDtypeStruct((N, 2), jnp.float32),
        grid=(pl.cdiv(N, r1),),
        in_specs=[pl.BlockSpec((r1, HW), lambda i: (i, 0))],
        out_specs=pl.BlockSpec((r1, 2), lambda i: (i, 0)),
        compiler_params=cparams,
    )(xr)

    # ---- tiny (B, C) mixing math in plain JAX, folded into scale/shift ------
    mu = stats[:, 0].reshape(B, C)
    sig = stats[:, 1].reshape(B, C)
    lm = lmda.reshape(B, 1)
    mu_mix = mu * lm + mu[perm] * (1.0 - lm)
    sig_mix = sig * lm + sig[perm] * (1.0 - lm)
    scale = sig_mix / sig
    shift = mu_mix - mu * scale
    ss = jnp.stack([scale, shift], axis=-1).reshape(N, 2).astype(jnp.float32)

    # ---- pass 2: one streaming read + one write of x, bare per-row FMA ------
    # TODO(synk): input_output_aliases={0: 0} would halve this op's peak HBM
    # footprint inside a larger graph; left off so the caller's x stays valid
    # for the self-check below.
    out = pl.pallas_call(
        apply_kernel,
        out_shape=jax.ShapeDtypeStruct((N, HW), x.dtype),
        grid=(pl.cdiv(N, r2),),
        in_specs=[
            pl.BlockSpec((r2, HW), lambda i: (i, 0)),
            pl.BlockSpec((r2, 2), lambda i: (i, 0)),
        ],
        out_specs=pl.BlockSpec((r2, HW), lambda i: (i, 0)),
        compiler_params=cparams,
    )(xr, ss)

    return out.reshape(B, C, H, W)


def _reference(x, lmda, perm):
    B = x.shape[0]
    mu = x.mean(axis=(2, 3), keepdims=True)
    var = x.var(axis=(2, 3), keepdims=True, ddof=1)   # torch .var() is unbiased
    sig = jnp.sqrt(var + EPS)
    x_normed = (x - mu) / sig
    l4 = lmda.reshape(B, 1, 1, 1)
    mu_mix = mu * l4 + mu[perm] * (1.0 - l4)
    sig_mix = sig * l4 + sig[perm] * (1.0 - l4)
    return x_normed * sig_mix + mu_mix


if __name__ == "__main__":
    key = jax.random.PRNGKey(0)

    # TODO(synk): the `random.random() > p` gate and the training/_activated
    # flags are host-side Python control flow (return x unchanged); kept
    # outside the kernel.
    # TODO(synk): torch detaches mu/sig before mixing; this is forward-only —
    # a custom_vjp would be needed to reproduce that gradient behaviour.

    # Case 1: the module's typical regime (HW a multiple of 128).
    k_x, k_beta, k_perm, key = jax.random.split(key, 4)
    B, C, H, W = 2, 4, 16, 16
    x = jax.random.normal(k_x, (B, C, H, W), dtype=jnp.float32)
    lmda = jax.random.beta(k_beta, 0.1, 0.1, (B,)).astype(jnp.float32)
    lmda = jnp.where(lmda < 0.5, 1.0 - lmda, lmda)    # lmda[lmda < 0.5] = 1 - lmda
    perm = jax.random.permutation(k_perm, B).astype(jnp.int32)

    y = mixstyle_pallas(x, lmda, perm)
    jax.block_until_ready(y)
    ref = _reference(x, lmda, perm)
    assert jnp.allclose(y, ref, atol=1e-4, rtol=1e-4), "mismatch vs reference (case 1)"

    # Case 2: HW not a multiple of 128 and a ragged row grid (no-padding path).
    k_x, k_beta, k_perm, key = jax.random.split(key, 4)
    B, C, H, W = 2, 5, 10, 10
    x = jax.random.normal(k_x, (B, C, H, W), dtype=jnp.float32)
    lmda = jax.random.beta(k_beta, 0.1, 0.1, (B,)).astype(jnp.float32)
    lmda = jnp.where(lmda < 0.5, 1.0 - lmda, lmda)
    perm = jax.random.permutation(k_perm, B).astype(jnp.int32)

    y2 = mixstyle_pallas(x, lmda, perm)
    jax.block_until_ready(y2)
    ref2 = _reference(x, lmda, perm)
    assert jnp.allclose(y2, ref2, atol=1e-4, rtol=1e-4), "mismatch vs reference (case 2)"

    print("KERNEL_OK")
</pallas_src>

<mosaic_0001>
module attributes {stable_mosaic.version = 11 : i64} {
  func.func @stats_kernel(%arg0: i32, %arg1: memref<8x256xf32, #tpu.memory_space<vmem>>, %arg2: memref<8x2xf32, #tpu.memory_space<vmem>>) attributes {dimension_semantics = [#tpu.dimension_semantics<parallel>], iteration_bounds = array<i64: 1>, scalar_prefetch = 0 : i64, scratch_operands = 0 : i64, tpu.core_type = #tpu.core_type<tc>, window_params = [{transform_indices = @transform_0, window_bounds = array<i64: 8, 256>}, {transform_indices = @transform_1, window_bounds = array<i64: 8, 2>}]} {
    %c0 = arith.constant 0 : index
    %c0_0 = arith.constant 0 : index
    %0 = vector.load %arg1[%c0, %c0_0] : memref<8x256xf32, #tpu.memory_space<vmem>>, vector<8x256xf32>
    %cst = arith.constant dense<0.000000e+00> : vector<8xf32>
    %1 = vector.multi_reduction <add>, %0, %cst [1] : vector<8x256xf32> to vector<8xf32>
    %2 = vector.shape_cast %1 : vector<8xf32> to vector<8x1xf32>
    %cst_1 = arith.constant 3.906250e-03 : f32
    %3 = vector.broadcast %cst_1 : f32 to vector<8x1xf32>
    %4 = arith.mulf %2, %3 : vector<8x1xf32>
    %5 = vector.broadcast %4 : vector<8x1xf32> to vector<8x256xf32>
    %6 = arith.subf %0, %5 : vector<8x256xf32>
    %7 = arith.mulf %6, %6 : vector<8x256xf32>
    %cst_2 = arith.constant dense<0.000000e+00> : vector<8xf32>
    %8 = vector.multi_reduction <add>, %7, %cst_2 [1] : vector<8x256xf32> to vector<8xf32>
    %9 = vector.shape_cast %8 : vector<8xf32> to vector<8x1xf32>
    %cst_3 = arith.constant 0.00392156886 : f32
    %10 = vector.broadcast %cst_3 : f32 to vector<8x1xf32>
    %11 = arith.mulf %9, %10 : vector<8x1xf32>
    %c0_4 = arith.constant 0 : index
    %c0_5 = arith.constant 0 : index
    %12 = vector.load %arg2[%c0_4, %c0_5] : memref<8x2xf32, #tpu.memory_space<vmem>>, vector<8x1xf32>
    tpu.vector_store %arg2[%c0_4, %c0_5], %4 {strides = array<i32>} : memref<8x2xf32, #tpu.memory_space<vmem>>, vector<8x1xf32>,
    %cst_6 = arith.constant 9.99999997E-7 : f32
    %13 = vector.broadcast %cst_6 : f32 to vector<8x1xf32>
    %14 = arith.addf %11, %13 : vector<8x1xf32>
    %15 = math.sqrt %14 : vector<8x1xf32>
    %c0_7 = arith.constant 0 : index
    %c1 = arith.constant 1 : index
    %16 = vector.load %arg2[%c0_7, %c1] : memref<8x2xf32, #tpu.memory_space<vmem>>, vector<8x1xf32>
    tpu.vector_store %arg2[%c0_7, %c1], %15 {strides = array<i32>} : memref<8x2xf32, #tpu.memory_space<vmem>>, vector<8x1xf32>,
    return
  }
  func.func @transform_0(%arg0: i32) -> (i32, i32) {
    %c0_i32 = arith.constant 0 : i32
    %c0_i32_0 = arith.constant 0 : i32
    return %arg0, %c0_i32 : i32, i32
  }
  func.func @transform_1(%arg0: i32) -> (i32, i32) {
    %c0_i32 = arith.constant 0 : i32
    %c0_i32_0 = arith.constant 0 : i32
    return %arg0, %c0_i32 : i32, i32
  }
}

</mosaic_0001>

<bundles_post_ra>
// kernel: tpu_custom_call.1
= control target key start
LH: loop header
LB: loop body
LE: loop exit
PB: predicated region body
PF: predicated region fallthrough
CT: control target
= control target key end

     0   :  { %6 = vsyncpa [#allocation3], 0  ;;  %s78_s6 = smov [#allocation2]   ;;  %s107_s0 = inlined_call_operand.hbm [shape: f32[8,256], index: 0, kind: input, shape index: {}]   ;;  %s108_s1 = inlined_call_operand.vmem [shape: f32[8,2], index: 1, kind: output, shape index: {}]  }
   0x1   :  { %s13_s7 = sshll.u32 %s78_s6, 4  ;;  %s54_s10 = scalar_lea.hbm %s107_s0, 256  ;;  %s14_s7 = int_to_ptr.vmem [resolvable:$true] %s13_s7 }
   0x2   :  { %p55_p0 = scmp.ne.s32.totalorder %s107_s0, %s54_s10  ;;  %p58_p1 = scmp.lt.u32.totalorder %s54_s10, %s107_s0 }
   0x4   :  { %p60_p2 = pnand %p58_p1, %p55_p0 }
   0x6   :  { %63 = shalt.err (!%p60_p2)
}
   0x7   :  { %s64_s15 = scalar_lea.vmem %s14_s7, 256  ;;  %p69_p4 = scmp.lt.s32.totalorder %s14_s7, %s14_s7 }
   0x8   :  { %p65_p3 = scmp.ne.s32.totalorder %s14_s7, %s64_s15  ;;  %p70_p5 = scmp.lt.s32.totalorder %s64_s15, %s64_s15 }
   0xa   :  { %p71_p6 = por %p70_p5, %p69_p4 }
   0xc   :  { %p72_p7 = pnand %p71_p6, %p65_p3 }
   0xe   :  { %75 = shalt.err (!%p72_p7)
}
   0xf   :  { %16 = dma.hbm_to_vmem [thread:$0]  %s107_s0, 256, %s14_s7, [#allocation3]  }
  0x10   :  { %76 = dma.done.wait [#allocation3], 256  }
  0x11   :  { %77 = vsyncadd [#allocation3], 4294967040  ;;  %v20_v0 = vld [vmem:[#allocation2] sm:$0xff]  ;;  %v21_v1 = vld [vmem:[#allocation2 + $0x8] sm:$0xff]  ;;  %vm34_vm0 = vcmask 7168   ;;  %vm44_vm1 = vcmask 15368  }
  0x12   :  { %v22_v2 = vadd.f32 %v21_v1, %v20_v0 }
  0x14   :  { %23 = vadd.xlane.f32.xlu0 %v22_v2 }
  0xa1   :  { %v24_v3 = vpop.xlane.xlu0 %23 }
  0xa2   :  { %v25_v4 = vmul.f32 0.00390625, %v24_v3 }
  0xa4   :  { %35 = vst.msk [vmem:[%s108_s1] sm:$0xff] %vm34_vm0, %v25_v4  ;;  %v26_v5 = vsub.f32 %v20_v0, %v25_v4  ;;  %v27_v6 = vsub.f32 %v21_v1, %v25_v4 }
  0xa6   :  { %v28_v7 = vmul.f32 %v26_v5, %v26_v5  ;;  %v29_v8 = vmul.f32 %v27_v6, %v27_v6 }
  0xa8   :  { %v30_v9 = vadd.f32 %v29_v8, %v28_v7 }
  0xaa   :  { %31 = vadd.xlane.f32.xlu0 %v30_v9 }
 0x137   :  { %v32_v10 = vpop.xlane.xlu0 %31 }
 0x138   :  { %v33_v11 = vmul.f32 0.003921569, %v32_v10 }
 0x13a   :  { %v36_v12 = vadd.f32 1e-06, %v33_v11 }
 0x13c   :  { %52 = vrsqrt.f32 %v36_v12  ;;  %vm39_vm2 = vcmp.eq.f32.partialorder %v36_v12, inf  ;;  %v42_v15 = vand.u32 2147483648, %v36_v12  ;;  %vm41_vm3 = vcmp.eq.f32.partialorder %v36_v12, 0.0 }
 0x146   :  { %v53_v13 = vpop.eup %52 }
 0x147   :  { %v38_v14 = vmul.f32 %v53_v13, %v36_v12 }
 0x149   :  { %v40_v16 = vsel %vm39_vm2, %v36_v12, %v38_v14 }
 0x14a   :  { %v43_v17 = vsel %vm41_vm3, %v42_v15, %v40_v16 }
 0x14b   :  { %45 = vst.msk [vmem:[%s108_s1] sm:$0xff] %vm44_vm1, %v43_v17 }
 0x14c   :  { %50 = vsyncpa [#allocation3], 1 }

</bundles_post_ra>
